<compile_context>
chip_gen: v6e
topology: v6e:2x2x1
jax: 0.10.0
libtpu: 0.0.40
codegen_flags: <defaults>
</compile_context>

<pallas_src>
import functools

import jax
import jax.numpy as jnp
from jax import lax
from jax.experimental import pallas as pl
from jax.experimental.pallas import tpu as pltpu


def _round_up(x, m):
    return ((x + m - 1) // m) * m


def _linear_kernel(x_ref, w_ref, o_ref):
    # x_ref: (TM, d_inp) tile, w_ref: (d_inp, d_model_pad) VMEM-resident weight,
    # o_ref: (TM, d_model_pad).  Exact f32 on the MXU (store-bound => extra MXU
    # passes are free), cast only on the final store.
    o_ref[...] = jnp.dot(
        x_ref[...],
        w_ref[...],
        preferred_element_type=jnp.float32,
        precision=lax.Precision.HIGHEST,
    ).astype(o_ref.dtype)


def init_time_feature_embedding(key, d_model, freq="h", dtype=jnp.float32):
    """One-time init (hoisted out of the per-call path).

    Builds the nn.Linear(d_inp, d_model, bias=False) weight with PyTorch's default
    uniform(+-1/sqrt(d_inp)) init, pre-transposes it and pads the output dim to a
    multiple of 128 so the kernel's output stores are unmasked, lane-dense vst.

    Returns (w [d_model, d_inp] for reference, w_t_pad [d_inp, d_model_pad], d_model).
    """
    freq_map = {"h": 4, "t": 5, "s": 6, "m": 1, "a": 1, "w": 2, "d": 3, "b": 3}
    d_inp = freq_map[freq]
    bound = 1.0 / (d_inp ** 0.5)
    w = jax.random.uniform(key, (d_model, d_inp), dtype=dtype,
                           minval=-bound, maxval=bound)
    w_t = w.T  # [d_inp, d_model]
    d_model_pad = _round_up(d_model, 128)
    if d_model_pad != d_model:
        w_t = jnp.pad(w_t, ((0, 0), (0, d_model_pad - d_model)))
    return w, w_t, d_model


def _choose_tile_m(M, d_model_pad):
    """Pick the row-tile size TM.

    Goals:
      * TM a multiple of 8 (sublane) unless it is the full tiny-M extent,
      * double-buffered (x tile + out tile) footprint under ~24 MiB (headroom
        under v7x's 32 MiB default scoped VMEM); the x tile is counted
        lane-padded to 128 lanes,
      * TM capped at 2048 rows (HBM roofline plateaus well before that),
      * at least 2 grid steps, preferably an even count of near-equal steps, so
        the 'parallel' M axis actually splits across v7x's two TensorCores.
    Returns (tm, tile_vmem_bytes).
    """
    bytes_per = 4  # f32 staging/compute

    def tile_bytes(tm):
        # x tile lane-padded to 128 + output tile, each double-buffered.
        return 2 * tm * (128 + d_model_pad) * bytes_per

    if M <= 8:
        return M, tile_bytes(8)

    budget = 24 * 1024 * 1024
    tm_cap = 2048
    while tm_cap > 8 and tile_bytes(tm_cap) > budget:
        tm_cap //= 2

    m8 = _round_up(M, 8)
    n_steps = max(2, pl.cdiv(m8, tm_cap))
    if n_steps % 2:
        n_steps += 1  # even number of near-equal steps -> balanced across 2 TCs
    tm = min(tm_cap, _round_up(pl.cdiv(m8, n_steps), 8))
    return tm, tile_bytes(tm)


@functools.partial(jax.jit, static_argnames=("d_model", "out_dtype"))
def time_feature_embedding(x, w_t_pad, *, d_model=None, out_dtype=None):
    """TimeFeatureEmbedding forward: x @ W^T (no bias).

    x:        [B, L, d_inp] time features
    w_t_pad:  [d_inp, d_model_pad] pre-transposed, lane-padded weight (from init)
    d_model:  true output width; default = padded width (no slice copy)
    out_dtype: set to jnp.bfloat16 to halve the dominant HBM write traffic when
               the DataEmbedding consumer tolerates it; default keeps x.dtype for
               exact nn.Linear parity.
    returns [B, L, d_model]
    """
    B, L, d_inp = x.shape
    d_model_pad = w_t_pad.shape[1]
    d_model = d_model_pad if d_model is None else d_model
    out_dtype = x.dtype if out_dtype is None else out_dtype

    M = B * L
    x_flat = x.reshape(M, d_inp)

    tm, tile_vmem = _choose_tile_m(M, d_model_pad)
    grid = (pl.cdiv(M, tm),)

    # Actual footprint: tiles + (sublane-padded, double-buffered) weight + headroom.
    w_vmem = 2 * 8 * d_model_pad * 4
    vmem_limit = int(min(tile_vmem + w_vmem + (4 << 20), 30 * 1024 * 1024))

    out_flat = pl.pallas_call(
        _linear_kernel,
        out_shape=jax.ShapeDtypeStruct((M, d_model_pad), out_dtype),
        grid=grid,
        in_specs=[
            pl.BlockSpec((tm, d_inp), lambda i: (i, 0)),
            # Constant index_map + full-extent block -> weight stays VMEM-resident.
            pl.BlockSpec((d_inp, d_model_pad), lambda i: (0, 0)),
        ],
        out_specs=pl.BlockSpec((tm, d_model_pad), lambda i: (i, 0)),
        compiler_params=pltpu.CompilerParams(
            dimension_semantics=("parallel",),  # shard M across v7x's two TCs
            vmem_limit_bytes=vmem_limit,
        ),
    )(x_flat, w_t_pad)

    if d_model != d_model_pad:
        # TODO(synk): let the DataEmbedding consumer accept the padded width (or
        # fuse this matmul into it) instead of paying this extra full HBM copy.
        out_flat = out_flat[:, :d_model]
    return out_flat.reshape(B, L, d_model)


if __name__ == "__main__":
    # freq='h' -> d_inp = 4; small demo shapes. d_model chosen as a 128 multiple so
    # the padded width equals d_model and no pad/slice path is exercised (the
    # common production configuration).
    freq = "h"
    d_model = 128
    B, L = 2, 8

    key = jax.random.PRNGKey(0)
    kx, kw = jax.random.split(key)

    # One-time init (weight padding hoisted out of the forward path).
    w, w_t_pad, d_model = init_time_feature_embedding(kw, d_model, freq=freq)
    d_inp = w.shape[1]

    x = jax.random.normal(kx, (B, L, d_inp), dtype=jnp.float32)

    y = time_feature_embedding(x, w_t_pad, d_model=d_model)
    y = jax.block_until_ready(y)

    # Pure-JAX reference (exact f32 as well, to match the kernel's HIGHEST precision).
    y_ref = jnp.einsum("bld,md->blm", x, w, precision=lax.Precision.HIGHEST)
    assert y.shape == (B, L, d_model)
    assert y.dtype == x.dtype
    assert jnp.allclose(y, y_ref, atol=1e-5, rtol=1e-5)

    print("KERNEL_OK")
</pallas_src>

<mosaic_0001>
module attributes {stable_mosaic.version = 11 : i64} {
  func.func @_linear_kernel(%arg0: i32, %arg1: memref<8x4xf32, #tpu.memory_space<vmem>>, %arg2: memref<4x128xf32, #tpu.memory_space<vmem>>, %arg3: memref<8x128xf32, #tpu.memory_space<vmem>>) attributes {dimension_semantics = [#tpu.dimension_semantics<parallel>], iteration_bounds = array<i64: 2>, scalar_prefetch = 0 : i64, scratch_operands = 0 : i64, tpu.core_type = #tpu.core_type<tc>, window_params = [{transform_indices = @transform_0, window_bounds = array<i64: 8, 4>}, {pipeline_mode = #tpu.pipeline_mode<synchronous>, transform_indices = @transform_1, window_bounds = array<i64: 4, 128>}, {transform_indices = @transform_2, window_bounds = array<i64: 8, 128>}]} {
    %c0 = arith.constant 0 : index
    %c0_0 = arith.constant 0 : index
    %0 = vector.load %arg1[%c0, %c0_0] : memref<8x4xf32, #tpu.memory_space<vmem>>, vector<8x4xf32>
    %c0_1 = arith.constant 0 : index
    %c0_2 = arith.constant 0 : index
    %1 = vector.load %arg2[%c0_1, %c0_2] : memref<4x128xf32, #tpu.memory_space<vmem>>, vector<4x128xf32>
    %cst = arith.constant dense<0.000000e+00> : vector<8x128xf32>
    %2 = tpu.matmul %0, %1, %cst {dimension_numbers = #tpu.dot_dimension_numbers<[1], [0], [0], [1], [0, 0, 1, 1], [], []>, precision = #tpu.contract_precision<fp32>} : vector<8x4xf32>, vector<4x128xf32>, vector<8x128xf32> -> vector<8x128xf32>
    %c0_3 = arith.constant 0 : index
    %c0_4 = arith.constant 0 : index
    %3 = vector.load %arg3[%c0_3, %c0_4] : memref<8x128xf32, #tpu.memory_space<vmem>>, vector<8x128xf32>
    tpu.vector_store %arg3[%c0_3, %c0_4], %2 {strides = array<i32>} : memref<8x128xf32, #tpu.memory_space<vmem>>, vector<8x128xf32>,
    return
  }
  func.func @transform_0(%arg0: i32) -> (i32, i32) {
    %c0_i32 = arith.constant 0 : i32
    %c0_i32_0 = arith.constant 0 : i32
    return %arg0, %c0_i32 : i32, i32
  }
  func.func @transform_1(%arg0: i32) -> (i32, i32) {
    %c0_i32 = arith.constant 0 : i32
    %c0_i32_0 = arith.constant 0 : i32
    %c0_i32_1 = arith.constant 0 : i32
    return %c0_i32, %c0_i32_0 : i32, i32
  }
  func.func @transform_2(%arg0: i32) -> (i32, i32) {
    %c0_i32 = arith.constant 0 : i32
    %c0_i32_0 = arith.constant 0 : i32
    return %arg0, %c0_i32 : i32, i32
  }
}

</mosaic_0001>

<bundles_post_ra>
// kernel: time_feature_embedding.1
= control target key start
LH: loop header
LB: loop body
LE: loop exit
PB: predicated region body
PF: predicated region fallthrough
CT: control target
= control target key end

     0   :  { %7 = vsyncpa [#allocation3], 0  ;;  %s938_s0 = inlined_call_operand.vmem [shape: f32[16,4], index: 0, kind: input, shape index: {}]   ;;  %s939_s1 = inlined_call_operand.vmem [shape: f32[4,128], index: 1, kind: input, shape index: {}]   ;;  %s940_s2 = inlined_call_operand.hbm [shape: f32[16,128], index: 2, kind: output, shape index: {}]  }
   0x1   :  { %9 = vsyncpa [#allocation3 + $0x1], 0  ;;  %s842_s9 = smov 0   ;;  %s844_s10 = smov 0  }
   0x2   :  { %s846_s11 = smov 0   ;;  %s848_s12 = smov 0  }
   0x3 LB: > { %s863_s13 = sadd.s32 4294967295, %s822_s12   ;;  %s669_s14 = sadd.s32 4294967294, %s822_s12   ;;  %s822_s12 = sphi %s848_s12, %s946_s12   ;;  %s818_s11 = sphi %s846_s11, %s945_s11   ;;  %s814_s10 = sphi %s844_s10, %s944_s10   ;;  %s810_s9 = sphi %s842_s9, %s943_s9  }
   0x4   : > { %s867_s15 = sadd.s32 1, %s822_s12   ;;  %s69_s16 = sadd.s32 1, %s818_s11 }
   0x5   : > { %s66_s17 = ssub.s32 %s822_s12, %s867_s15  ;;  %p79_p0 = scmp.ne.s32.totalorder %s818_s11, %s814_s10 }
   0x6   : > { %p67_p1 = scmp.eq.s32.totalorder %s66_s17, 0  ;;  %p80_p2 = scmp.eq.s32.totalorder %s863_s13, 1 }
   0x7   : > { %p85_p3 = scmp.ne.s32.totalorder %s814_s10, %s810_s9  ;;  %p86_p4 = scmp.eq.s32.totalorder %s669_s14, 1 }
   0x8   : > { %s878_s18 = scalar_select %p67_p1, %s818_s11, %s69_s16  }
   0x9   : > { %p880_p5 = por %p80_p2, %p79_p0  ;;  %p884_p6 = por %p86_p4, %p85_p3 }
   0xa   : > { %p672_p7 = scmp.ge.s32.totalorder %s822_s12, 1  ;;  %p114_p8 = scmp.lt.s32.totalorder %s822_s12, 3 }
   0xc   : > { %p115_p9 = pnand %p672_p7, %p114_p8 }
   0xd   : > { %p135_p10 = scmp.lt.s32.totalorder (!%p115_p9), %s863_s13, 1  ;;  %s132_s28 = sand.u32 (!%p115_p9), 1, %s814_s10  }
   0xe   : > { %118 = sbr.rel (%p115_p9) target bundleno = 253 (0xfd), region = 28  ;;  %s673_s29 = sshll.u32 (!%p115_p9), %s132_s28, 3 }
   0xf   : > { %s676_s30 = sshll.u32 (!%p115_p9), %s863_s13, 7  ;;  %s134_s3 = scalar_lea.vmem (!%p115_p9), [#allocation2], %s673_s29 }
  0x10   : > { %s610_s4 = sshll.u32 (!%p115_p9), %s134_s3, 4  ;;  %s608_s7 = scalar_lea.hbm (!%p115_p9), %s940_s2, %s676_s30  ;;  %s611_s4 = int_to_ptr.vmem [resolvable:$true] %s610_s4 }
  0x11   : > { %s597_s8 = scalar_lea.sflag (!%p115_p9), [#allocation3], %s132_s28  ;;  %s762_s14 = scalar_lea.vmem (!%p115_p9), %s611_s4, 128 }
  0x12   : > { %p763_p11 = scmp.ne.s32.totalorder (!%p115_p9), %s611_s4, %s762_s14  ;;  %s826_s16 = smov (!%p115_p9), [#allocation2]  }
  0x13   : > { %v140_v0 = vld [vmem:[%s939_s1] sm:$0xf]  ;;  %vm145_vm0 = vcmask 1043456   ;;  %v824_v1 = vmov 0.0   ;;  %vm825_vm1 = vmmov 0   ;;  %s136_s23 = scalar_select %p135_p10, %s863_s13, 1 }
  0x14   : > { %691 = vmatprep.subr.mxu0 %v824_v1  ;;  %v147_v2 = vsel %vm145_vm0, %v140_v0, 0  ;;  %696 = vmatprep.subr.mxu1 %v824_v1  ;;  %vm141_vm2 = vcmask 31744   ;;  %p764_p12 = pnand %p763_p11, %p880_p5  ;;  %s766_s17 = sshll.u32 %s826_s16, 4  ;;  %s767_s17 = int_to_ptr.vmem [resolvable:$false] %s766_s17 }
  0x15   : > { %v180_v3 = vand.u32 4294901760, %v147_v2  ;;  %693 = vmatprep.mubr.msk.f32.mxu0 %vm825_vm1, %v824_v1  ;;  %698 = vmatprep.mubr.msk.f32.mxu1 %vm825_vm1, %v824_v1  ;;  %s674_s24 = sshll.u32 %s136_s23, 3  ;;  %s768_s13 = scalar_lea.vmem %s767_s17, 256 }
  0x16   : > { %s138_s27 = scalar_lea.vmem %s938_s0, %s674_s24  ;;  %p765_p13 = pneg %p764_p12 }
  0x17   : > { %692 = vmatpush3.msra.mxu0 %v180_v3  ;;  %v257_v4 = vsub.f32 %v147_v2, %v180_v3  ;;  %v139_v6 = vld [vmem:[%s138_s27] sm:$0xff]  ;;  %p769_p0 = scmp.lt.s32.totalorder %s611_s4, %s767_s17  ;;  %p770_p1 = scmp.lt.s32.totalorder %s768_s13, %s762_s14 }
  0x18   : > { %701 = vmatprep.subr.mxu0 %v824_v1  ;;  %v143_v7 = vsel %vm141_vm2, %v139_v6, 0 }
  0x19   : > { %v258_v5 = vand.u32 4294901760, %v257_v4  ;;  %v215_v9 = vand.u32 4294901760, %v143_v7  ;;  %p771_p2 = por %p770_p1, %p769_p0 }
  0x1b   : > { %v259_v8 = vsub.f32 %v257_v4, %v258_v5  ;;  %v216_v11 = vsub.f32 %v143_v7, %v215_v9  ;;  %p772_p3 = pnand %p771_p2, %p765_p13 }
  0x1d   : > { %v260_v10 = vand.u32 4294901760, %v259_v8  ;;  %v217_v12 = vand.u32 4294901760, %v216_v11 }
  0x1f   : > { %697 = vmatpush3.msra.mxu1 %v260_v10  ;;  %v218_v13 = vsub.f32 %v216_v11, %v217_v12 }
  0x20   : > { %699 = vmatmul.mubr.f32.vlgmr.msra.gmra.mxu1 %v215_v9  ;;  %706 = vmatprep.subr.mxu1 %v824_v1 }
  0x21   : > { %707 = vmatpush3.msra.mxu1 %v180_v3  ;;  %708 = vmatprep.mubr.msk.f32.mxu1 %vm825_vm1, %v824_v1  ;;  %v219_v14 = vand.u32 4294901760, %v218_v13 }
  0x22   : > { %716 = vmatprep.subr.mxu1 %v824_v1 }
  0x23   : > { %694 = vmatmul.mubr.f32.vlgmr.msra.gmra.mxu0 %v219_v14 }
  0x24   : > { %709 = vmatmul.mubr.f32.vlgmr.msra.gmra.mxu1 %v217_v12  ;;  %702 = vmatpush3.msra.mxu0 %v257_v4 }
  0x25   : > { %717 = vmatpush3.msra.mxu1 %v180_v3  ;;  %703 = vmatprep.mubr.msk.f32.mxu0 %vm825_vm1, %v824_v1 }
  0x26   : > { %711 = vmatprep.subr.mxu0 %v824_v1  ;;  %718 = vmatprep.mubr.msk.f32.mxu1 %vm825_vm1, %v824_v1 }
  0x27   : > { %704 = vmatmul.mubr.f32.vlgmr.msra.gmra.mxu0 %v216_v11 }
  0x28   : > { %719 = vmatmul.mubr.f32.vlgmr.msra.gmra.mxu1 %v215_v9  ;;  %712 = vmatpush3.msra.mxu0 %v258_v5 }
  0x29   : > { %713 = vmatprep.mubr.msk.f32.mxu0 %vm825_vm1, %v824_v1 }
  0x2b   : > { %714 = vmatmul.mubr.f32.vlgmr.msra.gmra.mxu0 %v215_v9 }
  0xe0   : > { %v297_v15 = vpop.f32.mrf.mxu1 }
  0xe2   : > { %v700_v16 = vpop.f32.mrf.mxu1 }
  0xe3   : > { %v221_v18 = vpop.f32.mrf.mxu0 }
  0xe4   : > { %v445_v17 = vpop.f32.mrf.mxu1  ;;  %v298_v21 = vadd.f32 %v297_v15, %v221_v18 }
  0xe5   : > { %v695_v20 = vpop.f32.mrf.mxu0 }
  0xe6   : > { %v710_v19 = vpop.f32.mrf.mxu1 }
  0xe7   : > { %v371_v23 = vpop.f32.mrf.mxu0 }
  0xe8   : > { %v591_v22 = vpop.f32.mrf.mxu1  ;;  %v372_v24 = vadd.f32 %v371_v23, %v298_v21 }
  0xe9   : > { %v705_v26 = vpop.f32.mrf.mxu0 }
  0xea   : > { %v720_v25 = vpop.f32.mrf.mxu1  ;;  %v446_v27 = vadd.f32 %v445_v17, %v372_v24 }
  0xeb   : > { %v519_v28 = vpop.f32.mrf.mxu0 }
  0xec   : > { %v520_v29 = vadd.f32 %v519_v28, %v446_v27 }
  0xed   : > { %v715_v30 = vpop.f32.mrf.mxu0 }
  0xee   : > { %v592_v31 = vadd.f32 %v591_v22, %v520_v29 }
  0xf0   : > { %595 = vst [vmem:[%s134_s3] sm:$0xff] %v592_v31 }
  0xf1   : > { %775 = shalt.err (!%p772_p3)
}
  0xf2   : > { %s776_s21 = scalar_lea.hbm %s608_s7, 128  ;;  %s780_s24 = scalar_lea.hbm %s940_s2, 256 }
  0xf3   : > { %p777_p4 = scmp.ne.s32.totalorder %s608_s7, %s776_s21  ;;  %p781_p9 = scmp.lt.s32.totalorder %s608_s7, %s940_s2 }
  0xf4   : > { %p782_p10 = scmp.lt.s32.totalorder %s780_s24, %s776_s21 }
  0xf5   : > { %p778_p7 = pnand %p777_p4, %p880_p5 }
  0xf6   : > { %p783_p11 = por %p782_p10, %p781_p9 }
  0xf7   : > { %p779_p8 = pneg %p778_p7 }
  0xf9   : > { %p784_p12 = pnand %p783_p11, %p779_p8 }
  0xfb   : > { %787 = shalt.err (!%p784_p12)
}
  0xfc   : > { %721 = dma.vmem_to_hbm [thread:$0]  (%p880_p5), %s611_s4, 128, %s608_s7, %s597_s8  }
  0xfd PF: > { %p727_p13 = scmp.ge.s32.totalorder %s822_s12, 2  ;;  %s622_s27 = sand.u32 1, %s810_s9  }
  0xfe   : > { %s623_s28 = scalar_lea.sflag [#allocation3], %s622_s27 }
  0xff   : > { %p724_p0 = pnand %p727_p13, %p884_p6 }
 0x101   : > { %p725_p1 = pneg %p724_p0 }
 0x103   : > { %805 = dma.done.wait (%p725_p1), %s623_s28, 128  }
 0x104   : > { %807 = vsyncadd (%p725_p1), %s623_s28, 4294967168  ;;  %p12_p2 = scmp.ge.s32.totalorder %s867_s15, 4   ;;  %s943_s9 = smov %s814_s10 }
 0x105   : > { %s944_s10 = smov %s818_s11  ;;  %s945_s11 = smov %s878_s18 }
 0x106   : > { %s946_s12 = smov %s867_s15  ;;  %14 = sbr.rel (!%p12_p2) target bundleno = 3 (0x3), region = 63 }
 0x10b   :  { %628 = vsyncpa [#allocation3], 1 }
 0x10c   :  { %630 = vsyncpa [#allocation3 + $0x1], 1 }

</bundles_post_ra>
